<compile_context>
chip_gen: v6e
topology: v6e:2x2x1
jax: 0.10.0
libtpu: 0.0.40
codegen_flags: <defaults>
</compile_context>

<pallas_src>
import jax
import jax.numpy as jnp
from jax.experimental import pallas as pl
from jax.experimental.pallas import tpu as pltpu


def _round_up(x, m):
    return ((x + m - 1) // m) * m


# ----------------------------------------------------------------------------
# Pallas kernel: fused [obs_reducer+maxpool] -> (concat) -> Linear/ReLU torso
# -> value head
# ----------------------------------------------------------------------------
def _make_critic_kernel(num_hidden_layers, reduce_tf):
    """Kernel ref order:
        (obs, act, [wr, br,] W1a, W1b, b1, W2, b2, ..., Wn, bn, wv_row, bv, out)
    reduce_tf is None for 2-D observations, else (T, F): the obs block is the
    flattened (tb, T*F) slab and the kernel applies obs_reducer + MaxPool1d(2,2)
    over time before the torso.
    """

    def kernel(*refs):
        obs_ref, act_ref = refs[0], refs[1]
        o_ref = refs[-1]
        p = refs[2:-1]

        if reduce_tf is None:
            # First hidden layer: concat([obs, act]) fused via split weights.
            h = (
                jnp.dot(obs_ref[...], p[0][...], preferred_element_type=jnp.float32)
                + jnp.dot(act_ref[...], p[1][...], preferred_element_type=jnp.float32)
                + p[2][...]
            )
            idx = 3
        else:
            T, F = reduce_tf
            wr = p[0][...]                      # (F, F)        bf16
            br = p[1][...]                      # (1, F)        f32
            w1a = p[2][...]                     # (t_out*F, H1) bf16
            w1b = p[3][...]                     # (A, H1)       bf16
            b1 = p[4][...]                      # (1, H1)       f32
            idx = 5

            obs_all = obs_ref[...]              # (tb, T*F)     bf16
            # obs_reducer applied per time step (MXU, f32 accumulation).
            reduced = [
                jnp.dot(obs_all[:, t * F:(t + 1) * F], wr,
                        preferred_element_type=jnp.float32) + br
                for t in range(T)
            ]
            # MaxPool1d(kernel=2, stride=2) over the time axis (VPU).
            pooled = [jnp.maximum(reduced[2 * j], reduced[2 * j + 1])
                      for j in range(T // 2)]
            # First torso layer: each pooled time step multiplies its own
            # row-slice of W1 -> flatten + concat are fused away.
            h = jnp.dot(act_ref[...], w1b, preferred_element_type=jnp.float32) + b1
            for j in range(T // 2):
                h = h + jnp.dot(pooled[j].astype(jnp.bfloat16),
                                w1a[j * F:(j + 1) * F, :],
                                preferred_element_type=jnp.float32)

        h = jnp.maximum(h, 0.0)                 # ReLU (f32, VPU)

        for _ in range(num_hidden_layers - 1):
            w = p[idx][...]                     # bf16
            b = p[idx + 1][...]                 # f32
            idx += 2
            h = jnp.dot(h.astype(jnp.bfloat16), w,
                        preferred_element_type=jnp.float32) + b
            h = jnp.maximum(h, 0.0)

        # Value head (out_features == 1): VPU multiply + lane reduction instead
        # of an N=1 MXU pass; scalar bias comes from SMEM.
        wv_row = p[idx][...]                    # (1, H_last) f32
        bv = p[idx + 1][0, 0]                   # SMEM scalar
        v = jnp.sum(h * wv_row, axis=-1, keepdims=True) + bv
        o_ref[...] = v.astype(o_ref.dtype)

    return kernel


# ----------------------------------------------------------------------------
# Wrapper: batch-tiled pallas_call with VMEM-resident bf16 weights
# ----------------------------------------------------------------------------
def _critic_value_pallas(obs2d, act, torso_params, value_params,
                         reducer_params=None, reduce_tf=None, *,
                         max_tile_b=2048):
    """obs2d: (B, obs_cols); obs_cols == T*F when reduce_tf=(T, F) is given."""
    B, obs_cols = obs2d.shape
    act_f = act.shape[-1]
    num_hidden = len(torso_params)

    w1, b1 = torso_params[0]
    obs_feat = (reduce_tf[0] // 2) * reduce_tf[1] if reduce_tf else obs_cols
    assert obs_feat + act_f == w1.shape[0], (obs_feat, act_f, w1.shape)

    # Weights in bf16 (MXU inputs), biases / value-head row in f32.
    flat_params = []
    if reduce_tf is not None:
        wr, br = reducer_params
        flat_params += [wr.astype(jnp.bfloat16),
                        br.reshape(1, -1).astype(jnp.float32)]
    flat_params += [w1[:obs_feat].astype(jnp.bfloat16),
                    w1[obs_feat:].astype(jnp.bfloat16),
                    b1.reshape(1, -1).astype(jnp.float32)]
    for w, b in torso_params[1:]:
        flat_params += [w.astype(jnp.bfloat16),
                        b.reshape(1, -1).astype(jnp.float32)]
    wv, bv = value_params
    flat_params.append(wv.reshape(1, -1).astype(jnp.float32))
    bv_smem = bv.reshape(1, 1).astype(jnp.float32)

    # Large batch tiles (review): amortise the per-grid-step overhead.  No
    # jnp.pad: Pallas clips the ragged final block's reads/writes and rows are
    # independent, so garbage rows cannot contaminate real outputs.
    # (tb is either == B's 8-rounded value with grid==1, or 2048 (mult. of 16),
    #  so bf16 sublane tiling constraints are always satisfied.)
    tb = min(max_tile_b, _round_up(B, 8))
    grid = (pl.cdiv(B, tb),)

    tile_map = lambda i: (i, 0)
    fixed_map = lambda i: (0, 0)   # weights: DMA'd once, stay VMEM-resident

    in_specs = [
        pl.BlockSpec((tb, obs_cols), tile_map),
        pl.BlockSpec((tb, act_f), tile_map),
    ]
    in_specs += [pl.BlockSpec(p.shape, fixed_map) for p in flat_params]
    in_specs += [pl.BlockSpec(memory_space=pltpu.MemorySpace.SMEM)]  # bv scalar

    out = pl.pallas_call(
        _make_critic_kernel(num_hidden, reduce_tf),
        out_shape=jax.ShapeDtypeStruct((B, 1), jnp.float32),
        grid=grid,
        in_specs=in_specs,
        out_specs=pl.BlockSpec((tb, 1), tile_map),
        compiler_params=pltpu.CompilerParams(
            dimension_semantics=("parallel",)),
    )(obs2d.astype(jnp.bfloat16), act.astype(jnp.bfloat16),
      *flat_params, bv_smem)
    return out


# ----------------------------------------------------------------------------
# Critic forward (matches the PyTorch module semantics, deterministic head)
# ----------------------------------------------------------------------------
@jax.jit
def critic_forward(observations, actions, params):
    """params: dict with 'obs_reducer', 'torso', 'value'."""
    obs = observations.astype(jnp.float32)
    act = actions.astype(jnp.float32)

    if obs.ndim == 3:
        # obs_reducer + MaxPool1d(2,2) + flatten are fused into the kernel;
        # only a free row-major reshape to (B, T*F) happens here.
        B, T, F = obs.shape
        value = _critic_value_pallas(
            obs.reshape(B, T * F), act, params["torso"], params["value"],
            reducer_params=params["obs_reducer"], reduce_tf=(T, F))
    else:
        value = _critic_value_pallas(obs, act, params["torso"], params["value"])
    return jnp.squeeze(value, -1)   # torch.squeeze(value, -1)

# TODO(synk): critic_type='distributional' (51-atom Linear head returning a
# CategoricalWithSupport distribution object) is not implemented; only the
# default deterministic head is translated.


# ----------------------------------------------------------------------------
# Deterministic parameter initialization (mimics nn.Linear uniform init)
# ----------------------------------------------------------------------------
def init_params(key, observation_size, action_size, hidden_sizes):
    def linear(key, fan_in, fan_out):
        kw, kb = jax.random.split(key)
        bound = 1.0 / jnp.sqrt(fan_in)
        w = jax.random.uniform(kw, (fan_in, fan_out), jnp.float32, -bound, bound)
        b = jax.random.uniform(kb, (fan_out,), jnp.float32, -bound, bound)
        return w, b

    sizes = [observation_size + action_size] + list(hidden_sizes)
    keys = jax.random.split(key, len(sizes) + 1)

    torso = []
    for i in range(len(sizes) - 1):
        torso.append(linear(keys[i], sizes[i], sizes[i + 1]))
    value = linear(keys[len(sizes) - 1], hidden_sizes[-1], 1)
    obs_reducer = linear(keys[len(sizes)], observation_size, observation_size)
    return {"torso": torso, "value": value, "obs_reducer": obs_reducer}


# ----------------------------------------------------------------------------
if __name__ == "__main__":
    OBS, ACT = 16, 8
    HIDDEN = [32, 32]

    key = jax.random.PRNGKey(0)
    k_obs, k_act, k_obs3, k_params, k_big = jax.random.split(key, 5)
    params = init_params(k_params, OBS, ACT, HIDDEN)

    def ref_forward(obs, act, params, dot_dtype):
        """Pure-JAX reference (dot_dtype=bf16 mirrors the kernel's MXU quantization)."""
        obs = obs.astype(jnp.float32)
        act = act.astype(jnp.float32)
        if obs.ndim == 3:
            wr, br = params["obs_reducer"]
            red = jnp.einsum("btf,fg->btg", obs.astype(dot_dtype),
                             wr.astype(dot_dtype),
                             preferred_element_type=jnp.float32) + br
            B, T, F = obs.shape
            pooled = red[:, :(T // 2) * 2].reshape(B, T // 2, 2, F).max(axis=2)
            obs = pooled.reshape(act.shape[0], -1)
        h = jnp.concatenate([obs, act], axis=-1)
        for w, b in params["torso"]:
            h = jnp.dot(h.astype(dot_dtype), w.astype(dot_dtype),
                        preferred_element_type=jnp.float32) + b
            h = jnp.maximum(h, 0.0)
        wv, bv = params["value"]
        return jnp.sum(h * wv.reshape(1, -1), axis=-1) + bv[0]

    # ---- 2-D observations, small batch ----
    B = 8
    obs = jax.random.normal(k_obs, (B, OBS), jnp.float32)
    act = jax.random.normal(k_act, (B, ACT), jnp.float32)
    out = jax.block_until_ready(critic_forward(obs, act, params))
    assert out.shape == (B,), out.shape
    ref_q = ref_forward(obs, act, params, jnp.bfloat16)
    ref_f = ref_forward(obs, act, params, jnp.float32)
    assert jnp.allclose(out, ref_q, atol=1e-3, rtol=1e-3), (out, ref_q)
    assert jnp.allclose(out, ref_f, atol=1e-1, rtol=1e-1), (out, ref_f)

    # ---- 2-D observations, large ragged batch (multi-tile, no-pad path) ----
    B2 = 3001
    kb_o, kb_a = jax.random.split(k_big)
    obs_big = jax.random.normal(kb_o, (B2, OBS), jnp.float32)
    act_big = jax.random.normal(kb_a, (B2, ACT), jnp.float32)
    out_big = jax.block_until_ready(critic_forward(obs_big, act_big, params))
    assert out_big.shape == (B2,), out_big.shape
    ref_big = ref_forward(obs_big, act_big, params, jnp.bfloat16)
    assert jnp.allclose(out_big, ref_big, atol=1e-3, rtol=1e-3)

    # ---- 3-D observations (T=2 so pooled features match the torso input) ----
    obs3 = jax.random.normal(k_obs3, (B, 2, OBS), jnp.float32)
    out3 = jax.block_until_ready(critic_forward(obs3, act, params))
    assert out3.shape == (B,), out3.shape
    ref3 = ref_forward(obs3, act, params, jnp.bfloat16)
    assert jnp.allclose(out3, ref3, atol=1e-3, rtol=1e-3), (out3, ref3)

    print("KERNEL_OK")
</pallas_src>

<mosaic_0001>
module attributes {stable_mosaic.version = 11 : i64} {
  func.func @kernel(%arg0: i32, %arg1: memref<8x16xbf16, #tpu.memory_space<vmem>>, %arg2: memref<8x8xbf16, #tpu.memory_space<vmem>>, %arg3: memref<16x32xbf16, #tpu.memory_space<vmem>>, %arg4: memref<8x32xbf16, #tpu.memory_space<vmem>>, %arg5: memref<1x32xf32, #tpu.memory_space<vmem>>, %arg6: memref<32x32xbf16, #tpu.memory_space<vmem>>, %arg7: memref<1x32xf32, #tpu.memory_space<vmem>>, %arg8: memref<1x32xf32, #tpu.memory_space<vmem>>, %arg9: memref<1x1xf32, #tpu.memory_space<smem>>, %arg10: memref<8x1xf32, #tpu.memory_space<vmem>>) attributes {dimension_semantics = [#tpu.dimension_semantics<parallel>], iteration_bounds = array<i64: 1>, scalar_prefetch = 0 : i64, scratch_operands = 0 : i64, tpu.core_type = #tpu.core_type<tc>, window_params = [{transform_indices = @transform_0, window_bounds = array<i64: 8, 16>}, {transform_indices = @transform_1, window_bounds = array<i64: 8, 8>}, {pipeline_mode = #tpu.pipeline_mode<synchronous>, transform_indices = @transform_2, window_bounds = array<i64: 16, 32>}, {pipeline_mode = #tpu.pipeline_mode<synchronous>, transform_indices = @transform_3, window_bounds = array<i64: 8, 32>}, {pipeline_mode = #tpu.pipeline_mode<synchronous>, transform_indices = @transform_4, window_bounds = array<i64: 1, 32>}, {pipeline_mode = #tpu.pipeline_mode<synchronous>, transform_indices = @transform_5, window_bounds = array<i64: 32, 32>}, {pipeline_mode = #tpu.pipeline_mode<synchronous>, transform_indices = @transform_6, window_bounds = array<i64: 1, 32>}, {pipeline_mode = #tpu.pipeline_mode<synchronous>, transform_indices = @transform_7, window_bounds = array<i64: 1, 32>}, {transform_indices = @transform_8, window_bounds = array<i64: 1, 1>}, {transform_indices = @transform_9, window_bounds = array<i64: 8, 1>}]} {
    %c0 = arith.constant 0 : index
    %c0_0 = arith.constant 0 : index
    %0 = vector.load %arg1[%c0, %c0_0] : memref<8x16xbf16, #tpu.memory_space<vmem>>, vector<8x16xbf16>
    %c0_1 = arith.constant 0 : index
    %c0_2 = arith.constant 0 : index
    %1 = vector.load %arg3[%c0_1, %c0_2] : memref<16x32xbf16, #tpu.memory_space<vmem>>, vector<16x32xbf16>
    %cst = arith.constant dense<0.000000e+00> : vector<8x32xf32>
    %2 = tpu.matmul %0, %1, %cst {dimension_numbers = #tpu.dot_dimension_numbers<[1], [0], [0], [1], [0, 0, 1, 1], [], []>} : vector<8x16xbf16>, vector<16x32xbf16>, vector<8x32xf32> -> vector<8x32xf32>
    %c0_3 = arith.constant 0 : index
    %c0_4 = arith.constant 0 : index
    %3 = vector.load %arg2[%c0_3, %c0_4] : memref<8x8xbf16, #tpu.memory_space<vmem>>, vector<8x8xbf16>
    %c0_5 = arith.constant 0 : index
    %c0_6 = arith.constant 0 : index
    %4 = vector.load %arg4[%c0_5, %c0_6] : memref<8x32xbf16, #tpu.memory_space<vmem>>, vector<8x32xbf16>
    %cst_7 = arith.constant dense<0.000000e+00> : vector<8x32xf32>
    %5 = tpu.matmul %3, %4, %cst_7 {dimension_numbers = #tpu.dot_dimension_numbers<[1], [0], [0], [1], [0, 0, 1, 1], [], []>} : vector<8x8xbf16>, vector<8x32xbf16>, vector<8x32xf32> -> vector<8x32xf32>
    %6 = arith.addf %2, %5 : vector<8x32xf32>
    %c0_8 = arith.constant 0 : index
    %c0_9 = arith.constant 0 : index
    %7 = vector.load %arg5[%c0_8, %c0_9] : memref<1x32xf32, #tpu.memory_space<vmem>>, vector<1x32xf32>
    %8 = vector.broadcast %7 : vector<1x32xf32> to vector<8x32xf32>
    %9 = arith.addf %6, %8 : vector<8x32xf32>
    %cst_10 = arith.constant 0.000000e+00 : f32
    %10 = vector.broadcast %cst_10 : f32 to vector<8x32xf32>
    %11 = arith.maximumf %9, %10 : vector<8x32xf32>
    %c0_11 = arith.constant 0 : index
    %c0_12 = arith.constant 0 : index
    %12 = vector.load %arg6[%c0_11, %c0_12] : memref<32x32xbf16, #tpu.memory_space<vmem>>, vector<32x32xbf16>
    %c0_13 = arith.constant 0 : index
    %c0_14 = arith.constant 0 : index
    %13 = vector.load %arg7[%c0_13, %c0_14] : memref<1x32xf32, #tpu.memory_space<vmem>>, vector<1x32xf32>
    %14 = arith.truncf %11 : vector<8x32xf32> to vector<8x32xbf16>
    %cst_15 = arith.constant dense<0.000000e+00> : vector<8x32xf32>
    %15 = tpu.matmul %14, %12, %cst_15 {dimension_numbers = #tpu.dot_dimension_numbers<[1], [0], [0], [1], [0, 0, 1, 1], [], []>} : vector<8x32xbf16>, vector<32x32xbf16>, vector<8x32xf32> -> vector<8x32xf32>
    %16 = vector.broadcast %13 : vector<1x32xf32> to vector<8x32xf32>
    %17 = arith.addf %15, %16 : vector<8x32xf32>
    %cst_16 = arith.constant 0.000000e+00 : f32
    %18 = vector.broadcast %cst_16 : f32 to vector<8x32xf32>
    %19 = arith.maximumf %17, %18 : vector<8x32xf32>
    %c0_17 = arith.constant 0 : index
    %c0_18 = arith.constant 0 : index
    %20 = vector.load %arg8[%c0_17, %c0_18] : memref<1x32xf32, #tpu.memory_space<vmem>>, vector<1x32xf32>
    %c0_19 = arith.constant 0 : index
    %c0_20 = arith.constant 0 : index
    %21 = memref.load %arg9[%c0_19, %c0_20] : memref<1x1xf32, #tpu.memory_space<smem>>
    %22 = vector.broadcast %20 : vector<1x32xf32> to vector<8x32xf32>
    %23 = arith.mulf %19, %22 : vector<8x32xf32>
    %cst_21 = arith.constant dense<0.000000e+00> : vector<8xf32>
    %24 = vector.multi_reduction <add>, %23, %cst_21 [1] : vector<8x32xf32> to vector<8xf32>
    %25 = vector.shape_cast %24 : vector<8xf32> to vector<8x1xf32>
    %26 = vector.broadcast %21 : f32 to vector<8x1xf32>
    %27 = arith.addf %25, %26 : vector<8x1xf32>
    %c0_22 = arith.constant 0 : index
    %c0_23 = arith.constant 0 : index
    %28 = vector.load %arg10[%c0_22, %c0_23] : memref<8x1xf32, #tpu.memory_space<vmem>>, vector<8x1xf32>
    tpu.vector_store %arg10[%c0_22, %c0_23], %27 {strides = array<i32>} : memref<8x1xf32, #tpu.memory_space<vmem>>, vector<8x1xf32>,
    return
  }
  func.func @transform_0(%arg0: i32) -> (i32, i32) {
    %c0_i32 = arith.constant 0 : i32
    %c0_i32_0 = arith.constant 0 : i32
    return %arg0, %c0_i32 : i32, i32
  }
  func.func @transform_1(%arg0: i32) -> (i32, i32) {
    %c0_i32 = arith.constant 0 : i32
    %c0_i32_0 = arith.constant 0 : i32
    return %arg0, %c0_i32 : i32, i32
  }
  func.func @transform_2(%arg0: i32) -> (i32, i32) {
    %c0_i32 = arith.constant 0 : i32
    %c0_i32_0 = arith.constant 0 : i32
    %c0_i32_1 = arith.constant 0 : i32
    return %c0_i32, %c0_i32_0 : i32, i32
  }
  func.func @transform_3(%arg0: i32) -> (i32, i32) {
    %c0_i32 = arith.constant 0 : i32
    %c0_i32_0 = arith.constant 0 : i32
    %c0_i32_1 = arith.constant 0 : i32
    return %c0_i32, %c0_i32_0 : i32, i32
  }
  func.func @transform_4(%arg0: i32) -> (i32, i32) {
    %c0_i32 = arith.constant 0 : i32
    %c0_i32_0 = arith.constant 0 : i32
    %c0_i32_1 = arith.constant 0 : i32
    return %c0_i32, %c0_i32_0 : i32, i32
  }
  func.func @transform_5(%arg0: i32) -> (i32, i32) {
    %c0_i32 = arith.constant 0 : i32
    %c0_i32_0 = arith.constant 0 : i32
    %c0_i32_1 = arith.constant 0 : i32
    return %c0_i32, %c0_i32_0 : i32, i32
  }
  func.func @transform_6(%arg0: i32) -> (i32, i32) {
    %c0_i32 = arith.constant 0 : i32
    %c0_i32_0 = arith.constant 0 : i32
    %c0_i32_1 = arith.constant 0 : i32
    return %c0_i32, %c0_i32_0 : i32, i32
  }
  func.func @transform_7(%arg0: i32) -> (i32, i32) {
    %c0_i32 = arith.constant 0 : i32
    %c0_i32_0 = arith.constant 0 : i32
    %c0_i32_1 = arith.constant 0 : i32
    return %c0_i32, %c0_i32_0 : i32, i32
  }
  func.func @transform_8(%arg0: i32) -> (i32, i32) {
    %c0_i32 = arith.constant 0 : i32
    %c0_i32_0 = arith.constant 0 : i32
    %c0_i32_1 = arith.constant 0 : i32
    return %c0_i32, %c0_i32_0 : i32, i32
  }
  func.func @transform_9(%arg0: i32) -> (i32, i32) {
    %c0_i32 = arith.constant 0 : i32
    %c0_i32_0 = arith.constant 0 : i32
    return %arg0, %c0_i32 : i32, i32
  }
}

</mosaic_0001>

<bundles_post_ra>
// kernel: critic_forward.1
= control target key start
LH: loop header
LB: loop body
LE: loop exit
PB: predicated region body
PF: predicated region fallthrough
CT: control target
= control target key end

     0   :  { %vm43_vm0 = vcmask 1043456   ;;  %v276_v0 = vmov 0.0   ;;  %vm277_vm1 = vmmov 0   ;;  %vm39_vm2 = vcmask 64512   ;;  %s361_s3 = inlined_call_operand.vmem [shape: bf16[8,32], index: 3, kind: input, shape index: {}]   ;;  %s362_s2 = inlined_call_operand.vmem [shape: bf16[16,32], index: 2, kind: input, shape index: {}]   ;;  %s363_s1 = inlined_call_operand.vmem [shape: bf16[8,8], index: 1, kind: input, shape index: {}]   ;;  %s364_s0 = inlined_call_operand.vmem [shape: bf16[8,16], index: 0, kind: input, shape index: {}]   ;;  %s365_s5 = inlined_call_operand.vmem [shape: bf16[32,32], index: 5, kind: input, shape index: {}]   ;;  %s366_s4 = inlined_call_operand.vmem [shape: f32[1,32], index: 4, kind: input, shape index: {}]   ;;  %s367_s6 = inlined_call_operand.vmem [shape: f32[1,32], index: 6, kind: input, shape index: {}]   ;;  %s368_s7 = inlined_call_operand.vmem [shape: f32[1,32], index: 7, kind: input, shape index: {}]   ;;  %s369_s8 = inlined_call_operand.<no memory space> [shape: f32[1,1], index: 8, kind: input, shape index: {}]   ;;  %s370_s9 = inlined_call_operand.vmem [shape: f32[8,1], index: 9, kind: output, shape index: {}]  }
   0x1   :  { %251 = vmatprep.subr.bf16.mxu0 %v276_v0  ;;  %v38_v1 = vld [vmem:[%s361_s3] sm:$0xf]  ;;  %257 = vmatprep.subr.bf16.mxu1 %v276_v0  ;;  %vm93_vm3 = vcmask 130048   ;;  %v274_v6 = vld [vmem:[%s365_s5 + $0x8] sm:$0xff]   ;;  %vm170_vm4 = vcmask 261120   ;;  %v227_v31 = vstv %s369_s8  ;;  %vm229_vm5 = vcmask 7168  }
   0x2   :  { %v45_v2 = vsel %vm43_vm0, %v38_v1, 0  ;;  %v273_v3 = vld [vmem:[%s362_s2] sm:$0xff]   ;;  %253 = vmatprep.mubr.msk.bf16.mxu0 %vm277_vm1, %v276_v0  ;;  %259 = vmatprep.mubr.msk.bf16.mxu1 %vm277_vm1, %v276_v0 }
   0x3   :  { %252 = vmatpush3.bf16.msra.mxu0 %v45_v2  ;;  %v37_v4 = vld [vmem:[%s363_s1] sm:$0xf]  ;;  %258 = vmatpush3.bf16.msra.mxu1 %v273_v3 }
   0x4   :  { %v34_v5 = vld [vmem:[%s364_s0] sm:$0xf]  ;;  %263 = vmatprep.subr.bf16.mxu0 %v276_v0 }
   0x5   :  { %v275_v7 = vld [vmem:[%s365_s5] sm:$0xff]  }
   0x6   :  { %254 = vmatmul.mubr.msk.bf16.vlgmr.msra.gmra.mxu0 %vm39_vm2, %v37_v4  ;;  %260 = vmatmul.mubr.msk.bf16.vlgmr.msra.gmra.mxu1 %vm93_vm3, %v34_v5  ;;  %v238_v10 = vld [vmem:[%s366_s4] ss:$0 sm:$0xff] }
   0x7   :  { %267 = vmatprep.mubr.msk.bf16.mxu0 %vm277_vm1, %v276_v0  ;;  %264 = vmatpush3.bf16.msra.mxu0 %v274_v6  ;;  %v239_v21 = vld [vmem:[%s367_s6] ss:$0 sm:$0xff] }
   0x8   :  { %265 = vmatprep.subr.bf16.mxu0 %v276_v0  ;;  %v243_v25 = vld [vmem:[%s368_s7] ss:$0 sm:$0xff] }
   0xb   :  { %266 = vmatpush3.bf16.msra.mxu0 %v275_v7 }
  0xc6   :  { %v81_v8 = vpop.f32.mrf.mxu0  ;;  %v131_v9 = vpop.f32.mrf.mxu1 }
  0xc7   :  { %v132_v11 = vadd.f32 %v131_v9, %v81_v8 }
  0xc8   :  { %v255_v12 = vpop.f32.mrf.mxu0  ;;  %v261_v13 = vpop.f32.mrf.mxu1 }
  0xc9   :  { %v144_v14 = vadd.f32 %v238_v10, %v132_v11 }
  0xca   :  { %v84_v15 = vpop.f32.mrf.mxu0  ;;  %v134_v16 = vpop.f32.mrf.mxu1 }
  0xcb   :  { %v145_v17 = vmax.f32 %v144_v14, 0.0 }
  0xcc   :  { %v256_v18 = vpop.f32.mrf.mxu0  ;;  %v262_v19 = vpop.f32.mrf.mxu1 }
  0xcd   :  { %v151_v20 = vpack.c.bf16 %v145_v17, %v145_v17 }
  0xcf   :  { %268 = vmatmul.mubr.msk.bf16.vlgmr.msra.gmra.mxu0 %vm170_vm4, %v151_v20 }
 0x18f   :  { %v208_v22 = vpop.f32.mrf.mxu0 }
 0x190   :  { %v209_v23 = vadd.f32 %v239_v21, %v208_v22 }
 0x191   :  { %v269_v24 = vpop.f32.mrf.mxu0 }
 0x192   :  { %v214_v26 = vmax.f32 %v209_v23, 0.0 }
 0x193   :  { %v211_v27 = vpop.f32.mrf.mxu0 }
 0x194   :  { %v223_v28 = vmul.f32 %v243_v25, %v214_v26 }
 0x195   :  { %v270_v29 = vpop.f32.mrf.mxu0 }
 0x196   :  { %v224_v30 = vsel %vm170_vm4, %v223_v28, 0.0 }
 0x197   :  { %225 = vadd.xlane.f32.xlu0 %v224_v30 }
 0x220   :  { %v226_v32 = vpop.xlane.xlu0 %225 }
 0x221   :  { %v228_v33 = vadd.f32 %v227_v31, %v226_v32 }
 0x223   :  { %230 = vst.msk [vmem:[%s370_s9] sm:$0xff] %vm229_vm5, %v228_v33 }

</bundles_post_ra>
